<compile_context>
chip_gen: v5e
topology: v5e:2x2
jax: 0.10.0
libtpu: 0.0.40
codegen_flags: <defaults>
</compile_context>

<pallas_src>
import functools

import jax
import jax.numpy as jnp
from jax.experimental import pallas as pl
from jax.experimental.pallas import tpu as pltpu

_DIMS = [(12, 64), (64, 64), (64, 32), (32, 3)]   # (fan_in, fan_out) per layer


def _round_up(n, m):
    return ((n + m - 1) // m) * m


def mlp_kernel(x_ref, w1_ref, b1_ref, w2_ref, b2_ref, w3_ref, b3_ref,
               w4_ref, b4_ref, o_ref):
    # x_ref: [12, TB] bf16 batch tile; weights/biases are grid-invariant.
    h = jnp.dot(w1_ref[...], x_ref[...], preferred_element_type=jnp.float32)
    h = jnp.maximum(h + b1_ref[...], 0.0).astype(jnp.bfloat16)
    h = jnp.dot(w2_ref[...], h, preferred_element_type=jnp.float32)
    h = jnp.maximum(h + b2_ref[...], 0.0).astype(jnp.bfloat16)
    h = jnp.dot(w3_ref[...], h, preferred_element_type=jnp.float32)
    h = jnp.maximum(h + b3_ref[...], 0.0).astype(jnp.bfloat16)
    out = jnp.dot(w4_ref[...], h, preferred_element_type=jnp.float32) + b4_ref[...]
    o_ref[...] = out.astype(o_ref.dtype)


@functools.partial(jax.jit, static_argnames=("tb",))
def neural_network_3d_output(x, params, *, tb=8192):
    """Forward pass. x: [B, 12] f32; params: PyTorch-layout w{i} [out, in], b{i} [out]."""
    B = x.shape[0]

    # Few, large, balanced, lane-aligned (multiple of 128) batch tiles.
    # Force >=2 tiles for mid/large batches so the v7x megacore can split work.
    nb = pl.cdiv(B, tb)
    if nb < 2 and B >= 2048:
        nb = 2
    TB = _round_up(pl.cdiv(B, nb), 128)
    Bp = nb * TB

    # Batch-on-lanes layout + bf16 MXU operands (halves x HBM traffic).
    xT = x.astype(jnp.bfloat16).T                     # [12, B]
    if Bp != B:
        xT = jnp.pad(xT, ((0, 0), (0, Bp - B)))

    ws = [params[f"w{i}"].astype(jnp.bfloat16) for i in range(1, 5)]      # [out, in]
    bs = [params[f"b{i}"].astype(jnp.float32).reshape(-1, 1) for i in range(1, 5)]

    def const_spec(a):            # grid-invariant block -> stays resident in VMEM
        return pl.BlockSpec(a.shape, lambda i: (0, 0))

    in_specs = [pl.BlockSpec((12, TB), lambda i: (0, i))]
    args = [xT]
    for w, b in zip(ws, bs):
        in_specs += [const_spec(w), const_spec(b)]
        args += [w, b]

    flops = 2 * Bp * sum(fi * fo for fi, fo in _DIMS)
    bytes_accessed = (xT.size * 2 + Bp * 3 * 4
                      + sum(w.size * 2 for w in ws) + sum(b.size * 4 for b in bs))

    outT = pl.pallas_call(
        mlp_kernel,
        out_shape=jax.ShapeDtypeStruct((3, Bp), jnp.float32),
        grid=(nb,),
        in_specs=in_specs,
        out_specs=pl.BlockSpec((3, TB), lambda i: (0, i)),
        compiler_params=pltpu.CompilerParams(
            dimension_semantics=("parallel",),
            vmem_limit_bytes=32 * 1024 * 1024),
        cost_estimate=pl.CostEstimate(
            flops=flops, transcendentals=0, bytes_accessed=bytes_accessed),
    )(*args)

    return outT[:, :B].T                              # back to [B, 3] f32


def init_params(key):
    """PyTorch nn.Linear default init (U[-1/sqrt(fan_in), +]); PyTorch [out, in] layout."""
    params = {}
    for i, (fan_in, fan_out) in enumerate(_DIMS, start=1):
        key, kw, kb = jax.random.split(key, 3)
        bound = 1.0 / (fan_in ** 0.5)
        params[f"w{i}"] = jax.random.uniform(
            kw, (fan_out, fan_in), jnp.float32, -bound, bound)
        params[f"b{i}"] = jax.random.uniform(
            kb, (fan_out,), jnp.float32, -bound, bound)
    return params


def reference_forward(x, params):
    # Pure f32 reference with PyTorch semantics: y = x @ W.T + b.
    h = x
    for i in range(1, 4):
        h = jnp.maximum(h @ params[f"w{i}"].T + params[f"b{i}"], 0.0)
    return h @ params["w4"].T + params["b4"]


if __name__ == "__main__":
    key = jax.random.PRNGKey(0)
    key, kparams = jax.random.split(key)
    params = init_params(kparams)

    # Small primary case plus shapes exercising the padding and multi-tile paths.
    for B in (8, 300, 2500):
        key, kx = jax.random.split(key)
        x = jax.random.normal(kx, (B, 12), jnp.float32)
        out = jax.block_until_ready(neural_network_3d_output(x, params))
        ref = reference_forward(x, params)
        assert out.shape == (B, 3), out.shape
        # bf16 MXU operands with f32 accumulation -> loose tolerance vs f32 reference.
        assert jnp.allclose(out, ref, atol=5e-2, rtol=5e-2), f"mismatch vs reference at B={B}"
    print("KERNEL_OK")
</pallas_src>

<mosaic_0001>
module attributes {stable_mosaic.version = 11 : i64} {
  func.func @mlp_kernel(%arg0: i32, %arg1: memref<12x128xbf16, #tpu.memory_space<vmem>>, %arg2: memref<64x12xbf16, #tpu.memory_space<vmem>>, %arg3: memref<64x1xf32, #tpu.memory_space<vmem>>, %arg4: memref<64x64xbf16, #tpu.memory_space<vmem>>, %arg5: memref<64x1xf32, #tpu.memory_space<vmem>>, %arg6: memref<32x64xbf16, #tpu.memory_space<vmem>>, %arg7: memref<32x1xf32, #tpu.memory_space<vmem>>, %arg8: memref<3x32xbf16, #tpu.memory_space<vmem>>, %arg9: memref<3x1xf32, #tpu.memory_space<vmem>>, %arg10: memref<3x128xf32, #tpu.memory_space<vmem>>) attributes {dimension_semantics = [#tpu.dimension_semantics<parallel>], iteration_bounds = array<i64: 1>, scalar_prefetch = 0 : i64, scratch_operands = 0 : i64, tpu.core_type = #tpu.core_type<tc>, window_params = [{transform_indices = @transform_0, window_bounds = array<i64: 12, 128>}, {pipeline_mode = #tpu.pipeline_mode<synchronous>, transform_indices = @transform_1, window_bounds = array<i64: 64, 12>}, {pipeline_mode = #tpu.pipeline_mode<synchronous>, transform_indices = @transform_2, window_bounds = array<i64: 64, 1>}, {pipeline_mode = #tpu.pipeline_mode<synchronous>, transform_indices = @transform_3, window_bounds = array<i64: 64, 64>}, {pipeline_mode = #tpu.pipeline_mode<synchronous>, transform_indices = @transform_4, window_bounds = array<i64: 64, 1>}, {pipeline_mode = #tpu.pipeline_mode<synchronous>, transform_indices = @transform_5, window_bounds = array<i64: 32, 64>}, {pipeline_mode = #tpu.pipeline_mode<synchronous>, transform_indices = @transform_6, window_bounds = array<i64: 32, 1>}, {pipeline_mode = #tpu.pipeline_mode<synchronous>, transform_indices = @transform_7, window_bounds = array<i64: 3, 32>}, {pipeline_mode = #tpu.pipeline_mode<synchronous>, transform_indices = @transform_8, window_bounds = array<i64: 3, 1>}, {transform_indices = @transform_9, window_bounds = array<i64: 3, 128>}]} {
    %c0 = arith.constant 0 : index
    %c0_0 = arith.constant 0 : index
    %0 = vector.load %arg2[%c0, %c0_0] : memref<64x12xbf16, #tpu.memory_space<vmem>>, vector<64x12xbf16>
    %c0_1 = arith.constant 0 : index
    %c0_2 = arith.constant 0 : index
    %1 = vector.load %arg1[%c0_1, %c0_2] : memref<12x128xbf16, #tpu.memory_space<vmem>>, vector<12x128xbf16>
    %cst = arith.constant dense<0.000000e+00> : vector<64x128xf32>
    %2 = tpu.matmul %0, %1, %cst {dimension_numbers = #tpu.dot_dimension_numbers<[1], [0], [0], [1], [0, 0, 1, 1], [], []>} : vector<64x12xbf16>, vector<12x128xbf16>, vector<64x128xf32> -> vector<64x128xf32>
    %c0_3 = arith.constant 0 : index
    %c0_4 = arith.constant 0 : index
    %3 = vector.load %arg3[%c0_3, %c0_4] : memref<64x1xf32, #tpu.memory_space<vmem>>, vector<64x1xf32>
    %4 = vector.broadcast %3 : vector<64x1xf32> to vector<64x128xf32>
    %5 = arith.addf %2, %4 : vector<64x128xf32>
    %cst_5 = arith.constant 0.000000e+00 : f32
    %6 = vector.broadcast %cst_5 : f32 to vector<64x128xf32>
    %7 = arith.maximumf %5, %6 : vector<64x128xf32>
    %8 = arith.truncf %7 : vector<64x128xf32> to vector<64x128xbf16>
    %c0_6 = arith.constant 0 : index
    %c0_7 = arith.constant 0 : index
    %9 = vector.load %arg4[%c0_6, %c0_7] : memref<64x64xbf16, #tpu.memory_space<vmem>>, vector<64x64xbf16>
    %cst_8 = arith.constant dense<0.000000e+00> : vector<64x128xf32>
    %10 = tpu.matmul %9, %8, %cst_8 {dimension_numbers = #tpu.dot_dimension_numbers<[1], [0], [0], [1], [0, 0, 1, 1], [], []>} : vector<64x64xbf16>, vector<64x128xbf16>, vector<64x128xf32> -> vector<64x128xf32>
    %c0_9 = arith.constant 0 : index
    %c0_10 = arith.constant 0 : index
    %11 = vector.load %arg5[%c0_9, %c0_10] : memref<64x1xf32, #tpu.memory_space<vmem>>, vector<64x1xf32>
    %12 = vector.broadcast %11 : vector<64x1xf32> to vector<64x128xf32>
    %13 = arith.addf %10, %12 : vector<64x128xf32>
    %cst_11 = arith.constant 0.000000e+00 : f32
    %14 = vector.broadcast %cst_11 : f32 to vector<64x128xf32>
    %15 = arith.maximumf %13, %14 : vector<64x128xf32>
    %16 = arith.truncf %15 : vector<64x128xf32> to vector<64x128xbf16>
    %c0_12 = arith.constant 0 : index
    %c0_13 = arith.constant 0 : index
    %17 = vector.load %arg6[%c0_12, %c0_13] : memref<32x64xbf16, #tpu.memory_space<vmem>>, vector<32x64xbf16>
    %cst_14 = arith.constant dense<0.000000e+00> : vector<32x128xf32>
    %18 = tpu.matmul %17, %16, %cst_14 {dimension_numbers = #tpu.dot_dimension_numbers<[1], [0], [0], [1], [0, 0, 1, 1], [], []>} : vector<32x64xbf16>, vector<64x128xbf16>, vector<32x128xf32> -> vector<32x128xf32>
    %c0_15 = arith.constant 0 : index
    %c0_16 = arith.constant 0 : index
    %19 = vector.load %arg7[%c0_15, %c0_16] : memref<32x1xf32, #tpu.memory_space<vmem>>, vector<32x1xf32>
    %20 = vector.broadcast %19 : vector<32x1xf32> to vector<32x128xf32>
    %21 = arith.addf %18, %20 : vector<32x128xf32>
    %cst_17 = arith.constant 0.000000e+00 : f32
    %22 = vector.broadcast %cst_17 : f32 to vector<32x128xf32>
    %23 = arith.maximumf %21, %22 : vector<32x128xf32>
    %24 = arith.truncf %23 : vector<32x128xf32> to vector<32x128xbf16>
    %c0_18 = arith.constant 0 : index
    %c0_19 = arith.constant 0 : index
    %25 = vector.load %arg8[%c0_18, %c0_19] : memref<3x32xbf16, #tpu.memory_space<vmem>>, vector<3x32xbf16>
    %cst_20 = arith.constant dense<0.000000e+00> : vector<3x128xf32>
    %26 = tpu.matmul %25, %24, %cst_20 {dimension_numbers = #tpu.dot_dimension_numbers<[1], [0], [0], [1], [0, 0, 1, 1], [], []>} : vector<3x32xbf16>, vector<32x128xbf16>, vector<3x128xf32> -> vector<3x128xf32>
    %c0_21 = arith.constant 0 : index
    %c0_22 = arith.constant 0 : index
    %27 = vector.load %arg9[%c0_21, %c0_22] : memref<3x1xf32, #tpu.memory_space<vmem>>, vector<3x1xf32>
    %28 = vector.broadcast %27 : vector<3x1xf32> to vector<3x128xf32>
    %29 = arith.addf %26, %28 : vector<3x128xf32>
    %c0_23 = arith.constant 0 : index
    %c0_24 = arith.constant 0 : index
    %30 = vector.load %arg10[%c0_23, %c0_24] : memref<3x128xf32, #tpu.memory_space<vmem>>, vector<3x128xf32>
    tpu.vector_store %arg10[%c0_23, %c0_24], %29 {strides = array<i32>} : memref<3x128xf32, #tpu.memory_space<vmem>>, vector<3x128xf32>,
    return
  }
  func.func @transform_0(%arg0: i32) -> (i32, i32) {
    %c0_i32 = arith.constant 0 : i32
    %c0_i32_0 = arith.constant 0 : i32
    return %c0_i32, %arg0 : i32, i32
  }
  func.func @transform_1(%arg0: i32) -> (i32, i32) {
    %c0_i32 = arith.constant 0 : i32
    %c0_i32_0 = arith.constant 0 : i32
    %c0_i32_1 = arith.constant 0 : i32
    return %c0_i32, %c0_i32_0 : i32, i32
  }
  func.func @transform_2(%arg0: i32) -> (i32, i32) {
    %c0_i32 = arith.constant 0 : i32
    %c0_i32_0 = arith.constant 0 : i32
    %c0_i32_1 = arith.constant 0 : i32
    return %c0_i32, %c0_i32_0 : i32, i32
  }
  func.func @transform_3(%arg0: i32) -> (i32, i32) {
    %c0_i32 = arith.constant 0 : i32
    %c0_i32_0 = arith.constant 0 : i32
    %c0_i32_1 = arith.constant 0 : i32
    return %c0_i32, %c0_i32_0 : i32, i32
  }
  func.func @transform_4(%arg0: i32) -> (i32, i32) {
    %c0_i32 = arith.constant 0 : i32
    %c0_i32_0 = arith.constant 0 : i32
    %c0_i32_1 = arith.constant 0 : i32
    return %c0_i32, %c0_i32_0 : i32, i32
  }
  func.func @transform_5(%arg0: i32) -> (i32, i32) {
    %c0_i32 = arith.constant 0 : i32
    %c0_i32_0 = arith.constant 0 : i32
    %c0_i32_1 = arith.constant 0 : i32
    return %c0_i32, %c0_i32_0 : i32, i32
  }
  func.func @transform_6(%arg0: i32) -> (i32, i32) {
    %c0_i32 = arith.constant 0 : i32
    %c0_i32_0 = arith.constant 0 : i32
    %c0_i32_1 = arith.constant 0 : i32
    return %c0_i32, %c0_i32_0 : i32, i32
  }
  func.func @transform_7(%arg0: i32) -> (i32, i32) {
    %c0_i32 = arith.constant 0 : i32
    %c0_i32_0 = arith.constant 0 : i32
    %c0_i32_1 = arith.constant 0 : i32
    return %c0_i32, %c0_i32_0 : i32, i32
  }
  func.func @transform_8(%arg0: i32) -> (i32, i32) {
    %c0_i32 = arith.constant 0 : i32
    %c0_i32_0 = arith.constant 0 : i32
    %c0_i32_1 = arith.constant 0 : i32
    return %c0_i32, %c0_i32_0 : i32, i32
  }
  func.func @transform_9(%arg0: i32) -> (i32, i32) {
    %c0_i32 = arith.constant 0 : i32
    %c0_i32_0 = arith.constant 0 : i32
    return %c0_i32, %arg0 : i32, i32
  }
}

</mosaic_0001>

<bundles_post_ra>
// kernel: neural_network_3d_output.1
= control target key start
LH: loop header
LB: loop body
LE: loop exit
PB: predicated region body
PF: predicated region fallthrough
CT: control target
= control target key end

     0   :  { %v476_v0 = vmov 0   ;;  %vm129_vm0 = vcmask 1045504   ;;  %vm116_vm1 = vcmask 97280   ;;  %vm250_vm2 = vcmask 523264   ;;  %s642_s2 = inlined_call_operand.vmem [shape: f32[64,1], index: 2, kind: input, shape index: {}]   ;;  %s643_s0 = inlined_call_operand.vmem [shape: bf16[12,128], index: 0, kind: input, shape index: {}]   ;;  %s644_s1 = inlined_call_operand.vmem [shape: bf16[64,12], index: 1, kind: input, shape index: {}]   ;;  %s645_s4 = inlined_call_operand.vmem [shape: f32[64,1], index: 4, kind: input, shape index: {}]   ;;  %s646_s6 = inlined_call_operand.vmem [shape: f32[32,1], index: 6, kind: input, shape index: {}]   ;;  %s647_s8 = inlined_call_operand.vmem [shape: f32[3,1], index: 8, kind: input, shape index: {}]   ;;  %s648_s3 = inlined_call_operand.vmem [shape: bf16[64,64], index: 3, kind: input, shape index: {}]   ;;  %s649_s5 = inlined_call_operand.vmem [shape: bf16[32,64], index: 5, kind: input, shape index: {}]   ;;  %s650_s7 = inlined_call_operand.vmem [shape: bf16[3,32], index: 7, kind: input, shape index: {}]   ;;  %s651_s9 = inlined_call_operand.vmem [shape: f32[3,128], index: 9, kind: output, shape index: {}]  }
   0x1   :  { %473 = vset.pattern.permute.xlu0 %v476_v0  ;;  %v49_v1 = vld [vmem:[%s642_s2 + $0x30] sm:$0xff]  ;;  %v420_v2 = vld [vmem:[%s643_s0] sm:$0xf]  ;;  %v461_v3 = vld [vmem:[%s643_s0] sm:$0x30]  ;;  %474 = vset.pattern.permute.xlu1 %v476_v0  ;;  %vm380_vm3 = vcmask 261120  }
   0x2   :  { %83 = vperm.xlu0 %473, %v49_v1   ;;  %v421_v4 = vor.u32 %v461_v3, %v420_v2  ;;  %v47_v5 = vld [vmem:[%s642_s2 + $0x20] sm:$0xff]  ;;  %475 = vset.pattern.permute.xlu2 %v476_v0  ;;  %v50_v8 = vld [vmem:[%s642_s2 + $0x38] sm:$0xff]  ;;  %v48_v9 = vld [vmem:[%s642_s2 + $0x28] sm:$0xff] }
   0x3   :  { %73 = vperm.xlu1 %474, %v47_v5   ;;  %v457_v7 = vld [vmem:[%s644_s1] sm:$0xff]  ;;  %v45_v10 = vld [vmem:[%s642_s2 + $0x10] sm:$0xff]  ;;  %v44_v12 = vld [vmem:[%s642_s2 + $0x8] sm:$0xff] }
   0x4   :  { %v131_v6 = vsel %vm129_vm0, %v421_v4, 0  ;;  %63 = vperm.xlu2 %475, %v45_v10   ;;  %v43_v11 = vld [vmem:[%s642_s2] sm:$0xff]  ;;  %v458_v13 = vld [vmem:[%s644_s1 + $0x8] sm:$0xff]  ;;  %v189_v14 = vld [vmem:[%s645_s4 + $0x38] sm:$0xff] }
   0x5   :  { %140 = vmatpush.bf16.msra.mxu0 %v131_v6  ;;  %v186_v15 = vld [vmem:[%s645_s4 + $0x20] sm:$0xff]  ;;  %v46_v16 = vld [vmem:[%s642_s2 + $0x18] sm:$0xff]  ;;  %v188_v17 = vld [vmem:[%s645_s4 + $0x30] sm:$0xff] }
   0x6   :  { %v184_v18 = vld [vmem:[%s645_s4 + $0x10] sm:$0xff]  ;;  %v185_v19 = vld [vmem:[%s645_s4 + $0x18] sm:$0xff]  ;;  %v187_v21 = vld [vmem:[%s645_s4 + $0x28] sm:$0xff] }
   0x7   :  { %v459_v20 = vld [vmem:[%s644_s1 + $0x10] sm:$0xff]  ;;  %v183_v22 = vld [vmem:[%s645_s4 + $0x8] sm:$0xff]  ;;  %v182_v24 = vld [vmem:[%s645_s4] sm:$0xff] }
   0x8   :  { %422 = vmatmul.msk.bf16.vlgmr.msra.gmra.mxu0 %vm116_vm1, %v457_v7  ;;  %v310_v23 = vld [vmem:[%s646_s6 + $0x10] sm:$0xff]  ;;  %v308_v25 = vld [vmem:[%s646_s6] sm:$0xff]  ;;  %v309_v26 = vld [vmem:[%s646_s6 + $0x8] sm:$0xff] }
   0x9   :  { %v460_v27 = vld [vmem:[%s644_s1 + $0x18] sm:$0xff]  ;;  %v374_v29 = vld [vmem:[%s647_s8] sm:$0x7]  ;;  %v463_v4 = vld [vmem:[%s648_s3 + $0x8] sm:$0xff] }
   0xa   :  { %88 = vperm.xlu0 %473, %v50_v8   ;;  %v311_v28 = vld [vmem:[%s646_s6 + $0x18] sm:$0xff]  ;;  %v462_v2 = vld [vmem:[%s648_s3] sm:$0xff]  ;;  %v464_v5 = vld [vmem:[%s648_s3 + $0x10] sm:$0xff] }
   0xb   :  { %78 = vperm.xlu1 %474, %v48_v9   ;;  %v465_v3 = vld [vmem:[%s648_s3 + $0x18] sm:$0xff] }
   0xc   :  { %68 = vperm.xlu2 %475, %v46_v16  }
  0x12   :  { %53 = vperm.xlu0 %473, %v43_v11  }
  0x13   :  { %58 = vperm.xlu1 %474, %v44_v12  }
  0x14   :  { %222 = vperm.xlu2 %475, %v188_v17  }
  0x18   :  { %423 = vmatmul.msk.bf16.gmra.mxu0 %vm116_vm1, %v458_v13 }
  0x1a   :  { %227 = vperm.xlu0 %473, %v189_v14  }
  0x1b   :  { %212 = vperm.xlu1 %474, %v186_v15  }
  0x1c   :  { %217 = vperm.xlu2 %475, %v187_v21  }
  0x22   :  { %202 = vperm.xlu0 %473, %v184_v18  }
  0x23   :  { %207 = vperm.xlu1 %474, %v185_v19  }
  0x24   :  { %192 = vperm.xlu2 %475, %v182_v24  }
  0x28   :  { %424 = vmatmul.msk.bf16.gmra.mxu0 %vm116_vm1, %v459_v20 }
  0x2a   :  { %197 = vperm.xlu0 %473, %v183_v22  }
  0x2b   :  { %324 = vperm.xlu1 %474, %v310_v23  }
  0x2c   :  { %329 = vperm.xlu2 %475, %v311_v28  }
  0x32   :  { %314 = vperm.xlu0 %473, %v308_v25  }
  0x33   :  { %319 = vperm.xlu1 %474, %v309_v26  }
  0x34   :  { %377 = vperm.xlu2 %475, %v374_v29  }
  0x38   :  { %425 = vmatmul.msk.bf16.gmra.mxu0 %vm116_vm1, %v460_v27 }
  0x5e   :  { %v64_v39 = vpop.permute.xlu2 %63 }
  0x66   :  { %v69_v49 = vpop.permute.xlu2 %68 }
  0x6e   :  { %v223_v9 = vpop.permute.xlu2 %222 }
  0x74   :  { %v84_v37 = vpop.permute.xlu0 %83 }
  0x75   :  { %v74_v36 = vpop.permute.xlu1 %73 }
  0x76   :  { %v218_v22 = vpop.permute.xlu2 %217 }
  0x7c   :  { %v89_v41 = vpop.permute.xlu0 %88 }
  0x7d   :  { %v79_v40 = vpop.permute.xlu1 %78 }
  0x84   :  { %v54_v56 = vpop.permute.xlu0 %53 }
  0x85   :  { %v142_v30 = vpop.f32.mrf.mxu0  ;;  %v59_v53 = vpop.permute.xlu1 %58 }
  0x86   :  { %v143_v60 = vadd.f32 %v142_v30, %v54_v56 }
  0x88   :  { %v162_v0 = vmax.f32 %v143_v60, 0.0 }
  0x8c   :  { %v228_v11 = vpop.permute.xlu0 %227 }
  0x8d   :  { %v144_v31 = vpop.f32.mrf.mxu0  ;;  %v213_v19 = vpop.permute.xlu1 %212 }
  0x8e   :  { %v145_v57 = vadd.f32 %v144_v31, %v59_v53 }
  0x90   :  { %v163_v62 = vmax.f32 %v145_v57, 0.0 }
  0x92   :  { %v170_v1 = vpack.c.bf16 %v163_v62, %v162_v0  ;;  %v373_v62 = vld [vmem:[%s650_s7] sm:$0x3] }
  0x94   :  { %v203_v21 = vpop.permute.xlu0 %202 }
  0x95   :  { %v147_v32 = vpop.f32.mrf.mxu0  ;;  %v208_v24 = vpop.permute.xlu1 %207 }
  0x96   :  { %v148_v54 = vadd.f32 %v147_v32, %v64_v39 }
  0x98   :  { %v164_v61 = vmax.f32 %v148_v54, 0.0 }
  0x9c   :  { %v198_v31 = vpop.permute.xlu0 %197 }
  0x9d   :  { %v149_v33 = vpop.f32.mrf.mxu0 }
  0x9e   :  { %v150_v50 = vadd.f32 %v149_v33, %v69_v49 }
  0xa0   :  { %v165_v58 = vmax.f32 %v150_v50, 0.0 }
  0xa2   :  { %v171_v63 = vpack.c.bf16 %v165_v58, %v164_v61 }
  0xa4   :  { %v315_v54 = vpop.permute.xlu0 %314 }
  0xa5   :  { %v152_v34 = vpop.f32.mrf.mxu0 }
  0xa6   :  { %v153_v46 = vadd.f32 %v152_v34, %v74_v36 }
  0xa8   :  { %v166_v55 = vmax.f32 %v153_v46, 0.0  ;;  %v325_v46 = vpop.permute.xlu1 %324 }
  0xad   :  { %v154_v35 = vpop.f32.mrf.mxu0 }
  0xae   :  { %v155_v44 = vadd.f32 %v154_v35, %v79_v40  ;;  %v193_v35 = vpop.permute.xlu2 %192 }
  0xb0   :  { %v167_v51 = vmax.f32 %v155_v44, 0.0  ;;  %v320_v50 = vpop.permute.xlu1 %319 }
  0xb2   :  { %v172_v59 = vpack.c.bf16 %v167_v51, %v166_v55 }
  0xb5   :  { %v157_v38 = vpop.f32.mrf.mxu0 }
  0xb6   :  { %v158_v42 = vadd.f32 %v157_v38, %v84_v37 }
  0xb8   :  { %v168_v47 = vmax.f32 %v158_v42, 0.0  ;;  %v466_v42 = vld [vmem:[%s649_s5] sm:$0xff] }
  0xbd   :  { %v159_v43 = vpop.f32.mrf.mxu0 }
  0xbe   :  { %v160_v45 = vadd.f32 %v159_v43, %v89_v41  ;;  %v467_v43 = vld [vmem:[%s649_s5 + $0x8] sm:$0xff] }
  0xc0   :  { %v169_v48 = vmax.f32 %v160_v45, 0.0 }
  0xc2   :  { %v173_v52 = vpack.c.bf16 %v169_v48, %v168_v47  ;;  %v330_v48 = vpop.permute.xlu2 %329 }
  0xc4   :  { %267 = vmatpush.bf16.msra.mxu1 %v173_v52  ;;  %468 = vmatpush.bf16.msra.mxu3 %v173_v52 }
  0xc8   :  { %268 = vmatpush.bf16.msra.mxu1 %v172_v59  ;;  %469 = vmatpush.bf16.msra.mxu3 %v172_v59 }
  0xcc   :  { %269 = vmatpush.bf16.msra.mxu1 %v171_v63  ;;  %470 = vmatpush.bf16.msra.mxu3 %v171_v63  ;;  %v378_v63 = vpop.permute.xlu2 %377 }
  0xd0   :  { %270 = vmatpush.bf16.msra.mxu1 %v170_v1  ;;  %471 = vmatpush.bf16.msra.mxu3 %v170_v1 }
  0xd3   :  { %442 = vmatmul.msk.bf16.vlgmr.msra.gmra.mxu1 %vm250_vm2, %v462_v2  ;;  %445 = vmatmul.msk.bf16.vlgmr.msra.gmra.mxu3 %vm250_vm2, %v465_v3 }
  0xe3   :  { %443 = vmatmul.msk.bf16.gmra.mxu1 %vm250_vm2, %v463_v4 }
  0xf3   :  { %444 = vmatmul.msk.bf16.gmra.mxu1 %vm250_vm2, %v464_v5 }
 0x150   :  { %v272_v6 = vpop.f32.mrf.mxu1 }
 0x151   :  { %v273_v36 = vadd.f32 %v272_v6, %v193_v35 }
 0x153   :  { %v292_v40 = vmax.f32 %v273_v36, 0.0 }
 0x156   :  { %v287_v7 = vpop.f32.mrf.mxu3 }
 0x157   :  { %v288_v10 = vadd.f32 %v287_v7, %v223_v9 }
 0x158   :  { %v274_v8 = vpop.f32.mrf.mxu1 }
 0x159   :  { %v298_v15 = vmax.f32 %v288_v10, 0.0  ;;  %v275_v32 = vadd.f32 %v274_v8, %v198_v31 }
 0x15b   :  { %v293_v38 = vmax.f32 %v275_v32, 0.0 }
 0x15d   :  { %v300_v41 = vpack.c.bf16 %v293_v38, %v292_v40 }
 0x15e   :  { %v289_v12 = vpop.f32.mrf.mxu3 }
 0x15f   :  { %v290_v13 = vadd.f32 %v289_v12, %v228_v11 }
 0x160   :  { %v277_v14 = vpop.f32.mrf.mxu1 }
 0x161   :  { %v299_v16 = vmax.f32 %v290_v13, 0.0  ;;  %v278_v28 = vadd.f32 %v277_v14, %v203_v21 }
 0x163   :  { %v303_v17 = vpack.c.bf16 %v299_v16, %v298_v15  ;;  %v294_v37 = vmax.f32 %v278_v28, 0.0 }
 0x165   :  { %352 = vmatpush.bf16.msra.mxu2 %v303_v17 }
 0x168   :  { %v279_v18 = vpop.f32.mrf.mxu1 }
 0x169   :  { %v280_v26 = vadd.f32 %v279_v18, %v208_v24 }
 0x16b   :  { %v295_v33 = vmax.f32 %v280_v26, 0.0 }
 0x16d   :  { %v301_v39 = vpack.c.bf16 %v295_v33, %v294_v37 }
 0x170   :  { %v282_v20 = vpop.f32.mrf.mxu1 }
 0x171   :  { %v283_v23 = vadd.f32 %v282_v20, %v213_v19 }
 0x173   :  { %v296_v29 = vmax.f32 %v283_v23, 0.0 }
 0x178   :  { %v284_v25 = vpop.f32.mrf.mxu1 }
 0x179   :  { %v285_v27 = vadd.f32 %v284_v25, %v218_v22 }
 0x17b   :  { %v297_v30 = vmax.f32 %v285_v27, 0.0 }
 0x17d   :  { %v302_v34 = vpack.c.bf16 %v297_v30, %v296_v29 }
 0x17f   :  { %353 = vmatpush.bf16.msra.mxu2 %v302_v34 }
 0x183   :  { %354 = vmatpush.bf16.msra.mxu2 %v301_v39 }
 0x187   :  { %355 = vmatpush.bf16.msra.mxu2 %v300_v41 }
 0x18a   :  { %454 = vmatmul.msk.bf16.vlgmr.msra.gmra.mxu2 %vm250_vm2, %v466_v42 }
 0x19a   :  { %455 = vmatmul.msk.bf16.gmra.mxu2 %vm250_vm2, %v467_v43 }
 0x20d   :  { %v357_v44 = vpop.f32.mrf.mxu2 }
 0x20e   :  { %v358_v55 = vadd.f32 %v357_v44, %v315_v54 }
 0x210   :  { %v367_v60 = vmax.f32 %v358_v55, 0.0 }
 0x215   :  { %v359_v45 = vpop.f32.mrf.mxu2 }
 0x216   :  { %v360_v52 = vadd.f32 %v359_v45, %v320_v50 }
 0x218   :  { %v368_v58 = vmax.f32 %v360_v52, 0.0 }
 0x21a   :  { %v371_v61 = vpack.c.bf16 %v368_v58, %v367_v60 }
 0x21d   :  { %v362_v47 = vpop.f32.mrf.mxu2 }
 0x21e   :  { %v363_v49 = vadd.f32 %v362_v47, %v325_v46 }
 0x220   :  { %v369_v56 = vmax.f32 %v363_v49, 0.0 }
 0x225   :  { %v364_v51 = vpop.f32.mrf.mxu2 }
 0x226   :  { %v365_v53 = vadd.f32 %v364_v51, %v330_v48 }
 0x228   :  { %v370_v57 = vmax.f32 %v365_v53, 0.0 }
 0x22a   :  { %v372_v59 = vpack.c.bf16 %v370_v57, %v369_v56 }
 0x22c   :  { %390 = vmatpush.bf16.msrb.mxu3 %v372_v59 }
 0x230   :  { %391 = vmatpush.bf16.msrb.mxu3 %v371_v61 }
 0x233   :  { %456 = vmatmul.msk.bf16.vlgmr.msrb.gmra.mxu3 %vm380_vm3, %v373_v62 }
 0x2b6   :  { %v393_v0 = vpop.f32.mrf.mxu3 }
 0x2b7   :  { %v394_v1 = vadd.f32 %v393_v0, %v378_v63 }
 0x2b9   :  { %397 = vst [vmem:[%s651_s9] sm:$0x7] %v394_v1 }
 0x2be   :  { %v395_v2 = vpop.f32.mrf.mxu3 }

</bundles_post_ra>
